<compile_context>
chip_gen: v7x
topology: tpu7x:2x2x1
jax: 0.10.0
libtpu: 0.0.40
codegen_flags: <defaults>
</compile_context>

<pallas_src>
import functools

import jax
import jax.numpy as jnp
import numpy as np
from jax import lax
from jax.experimental import pallas as pl
from jax.experimental.pallas import tpu as pltpu


def _round_up(x, m):
    return ((x + m - 1) // m) * m


def _lsoftmax_kernel(feat_i_ref, feat_j_ref, wt_ref, b_ref, lab_i_ref, lab_j_ref,
                     logits_ref, ce_ref, scl_ref, valid_ref,
                     fn_i_sc, bottom_sc, possum_sc, total_sc,
                     *, inv_t, n_rows, n_cls):
    i = pl.program_id(0)
    j = pl.program_id(1)
    bi = feat_i_ref.shape[0]
    bj = feat_j_ref.shape[0]
    cp = wt_ref.shape[1]

    # ---------- once per row-block (j == 0): logits, per-row CE, fn_i, acc init ----------
    @pl.when(j == 0)
    def _():
        feat_i = feat_i_ref[...]                                              # (bi, D)
        logits = jnp.dot(feat_i, wt_ref[...],
                         preferred_element_type=jnp.float32) + b_ref[...]     # (bi, cp)
        logits_ref[...] = logits                                              # lane-dense (cp % 128 == 0)

        cls_iota = lax.broadcasted_iota(jnp.int32, (bi, cp), 1)
        cls_ok = cls_iota < n_cls
        masked = jnp.where(cls_ok, logits, -jnp.inf)
        m = jnp.max(masked, axis=-1, keepdims=True)                           # (bi, 1)
        e = jnp.where(cls_ok, jnp.exp(logits - m), 0.0)
        lse = m + jnp.log(jnp.sum(e, axis=-1, keepdims=True))
        onehot = (cls_iota == lab_i_ref[...]).astype(jnp.float32)
        picked = jnp.sum(logits * onehot, axis=-1, keepdims=True)
        ce_ref[...] = lse - picked                                            # per-row CE term

        # F.normalize(p=2, dim=1): x / max(||x||, 1e-12) == x * rsqrt(max(||x||^2, 1e-24))
        sumsq = jnp.sum(feat_i * feat_i, axis=-1, keepdims=True)
        fn_i_sc[...] = feat_i * lax.rsqrt(jnp.maximum(sumsq, 1e-24))

        bottom_sc[...] = jnp.zeros_like(bottom_sc)
        possum_sc[...] = jnp.zeros_like(possum_sc)
        total_sc[...] = jnp.zeros_like(total_sc)

    # ---------- every (i, j): streaming accumulation of the SupCon terms ----------
    feat_j = feat_j_ref[...]                                                  # (bj, D)
    sumsq_j = jnp.sum(feat_j * feat_j, axis=-1, keepdims=True)
    fn_j = feat_j * lax.rsqrt(jnp.maximum(sumsq_j, 1e-24))

    sim = lax.dot_general(fn_i_sc[...], fn_j, (((1,), (1,)), ((), ())),
                          preferred_element_type=jnp.float32) * inv_t         # (bi, bj)

    grow = i * bi + lax.broadcasted_iota(jnp.int32, (bi, bj), 0)
    gcol = j * bj + lax.broadcasted_iota(jnp.int32, (bi, bj), 1)
    col_ok = gcol < n_rows
    offdiag = (grow != gcol) & col_ok
    pos = offdiag & (lab_i_ref[...] == lab_j_ref[...])

    exp_sim = jnp.exp(sim)
    bottom_sc[...] += jnp.sum(jnp.where(offdiag, exp_sim, 0.0), axis=-1, keepdims=True)
    possum_sc[...] += jnp.sum(jnp.where(pos, sim, 0.0), axis=-1, keepdims=True)
    total_sc[...] += jnp.sum(pos.astype(jnp.float32), axis=-1, keepdims=True)

    # ---------- finalize per-row SCL contribution (j == last) ----------
    @pl.when(j == pl.num_programs(1) - 1)
    def _():
        total = total_sc[...]
        bottom = jnp.maximum(bottom_sc[...], 1e-30)
        # identity: sum over positives of log(exp(sim)/bottom) == sum_pos(sim) - total*log(bottom)
        sum_log = possum_sc[...] - total * jnp.log(bottom)
        has_pos = total > 0.0
        per_sample = jnp.where(has_pos, -sum_log / jnp.maximum(total, 1.0), 0.0)
        scl_ref[...] = per_sample
        valid_ref[...] = has_pos.astype(jnp.float32)


def lsoftmax_forward(feat, labels, weight, bias, *, t_scale=0.3, lam2=0.1):
    """Returns (logits, total_loss, scl_loss) — mirrors LSoftmax.forward with labels given."""
    feat = jnp.asarray(feat, jnp.float32)
    weight = jnp.asarray(weight, jnp.float32)
    bias = jnp.asarray(bias, jnp.float32)
    labels = jnp.asarray(labels, jnp.int32)

    N, D = feat.shape
    C = weight.shape[0]

    # --- tiling: one row-block if N <= 128, else 128-row blocks (MXU/lane aligned) ---
    if N <= 128:
        blk = _round_up(max(N, 8), 8)
        n_pad = blk
    else:
        blk = 128
        n_pad = _round_up(N, blk)
    cp = _round_up(C, 128)                      # lane-dense logits output

    feat_p = jnp.zeros((n_pad, D), jnp.float32).at[:N].set(feat)
    lab_p = jnp.full((n_pad,), -1, jnp.int32).at[:N].set(labels)
    wt_p = jnp.zeros((D, cp), jnp.float32).at[:, :C].set(weight.T)
    b_p = jnp.zeros((1, cp), jnp.float32).at[:, :C].set(bias.reshape(1, C))
    lab_col = lab_p.reshape(n_pad, 1)
    lab_row = lab_p.reshape(1, n_pad)

    n_i = n_pad // blk
    n_j = n_pad // blk

    kernel = functools.partial(_lsoftmax_kernel, inv_t=float(1.0 / t_scale),
                               n_rows=int(N), n_cls=int(C))

    grid_spec = pltpu.PrefetchScalarGridSpec(
        num_scalar_prefetch=0,
        grid=(n_i, n_j),
        in_specs=[
            pl.BlockSpec((blk, D), lambda i, j: (i, 0)),      # feat rows (i-block)
            pl.BlockSpec((blk, D), lambda i, j: (j, 0)),      # feat rows (j-block, streamed)
            pl.BlockSpec((D, cp), lambda i, j: (0, 0)),       # W^T (resident)
            pl.BlockSpec((1, cp), lambda i, j: (0, 0)),       # bias
            pl.BlockSpec((blk, 1), lambda i, j: (i, 0)),      # labels as column (i-block)
            pl.BlockSpec((1, blk), lambda i, j: (0, j)),      # labels as row (j-block)
        ],
        out_specs=[
            pl.BlockSpec((blk, cp), lambda i, j: (i, 0)),     # logits (padded classes)
            pl.BlockSpec((blk, 1), lambda i, j: (i, 0)),      # per-row CE term
            pl.BlockSpec((blk, 1), lambda i, j: (i, 0)),      # per-row SCL term
            pl.BlockSpec((blk, 1), lambda i, j: (i, 0)),      # per-row validity
        ],
        scratch_shapes=[
            pltpu.VMEM((blk, D), jnp.float32),                # normalized fn_i
            pltpu.VMEM((blk, 1), jnp.float32),                # bottom accumulator
            pltpu.VMEM((blk, 1), jnp.float32),                # sum_pos(sim) accumulator
            pltpu.VMEM((blk, 1), jnp.float32),                # positive count accumulator
        ],
    )

    logits_p, ce_row, scl_row, valid_row = pl.pallas_call(
        kernel,
        out_shape=(
            jax.ShapeDtypeStruct((n_pad, cp), jnp.float32),
            jax.ShapeDtypeStruct((n_pad, 1), jnp.float32),
            jax.ShapeDtypeStruct((n_pad, 1), jnp.float32),
            jax.ShapeDtypeStruct((n_pad, 1), jnp.float32),
        ),
        grid_spec=grid_spec,
        compiler_params=pltpu.CompilerParams(
            dimension_semantics=("parallel", "arbitrary")),
    )(feat_p, feat_p, wt_p, b_p, lab_col, lab_row)

    logits = logits_p[:N, :C]
    ce = jnp.mean(ce_row[:N, 0])
    n_valid = jnp.sum(valid_row[:N, 0])
    scl = jnp.where(n_valid > 0,
                    jnp.sum(scl_row[:N, 0]) / jnp.maximum(n_valid, 1.0),
                    jnp.zeros((), jnp.float32))
    loss = (1.0 - float(lam2)) * ce + float(lam2) * scl
    return logits, loss, scl


# ---------------- numpy float64 reference (mathematically identical to the PyTorch loops) ---------------
def _ref_forward(feat, labels, weight, bias, t_scale=0.3, lam2=0.1):
    feat = np.asarray(feat, np.float64)
    labels = np.asarray(labels)
    weight = np.asarray(weight, np.float64)
    bias = np.asarray(bias, np.float64)
    N = feat.shape[0]

    logits = feat @ weight.T + bias
    mx = logits.max(axis=1, keepdims=True)
    lse = mx[:, 0] + np.log(np.exp(logits - mx).sum(axis=1))
    ce = float(np.mean(lse - logits[np.arange(N), labels]))

    nrm = np.maximum(np.linalg.norm(feat, axis=1, keepdims=True), 1e-12)
    fn = feat / nrm
    sim = fn @ fn.T / t_scale
    off = ~np.eye(N, dtype=bool)
    pos = off & (labels[:, None] == labels[None, :])
    bottom = (np.exp(sim) * off).sum(axis=1)
    total = pos.sum(axis=1)
    # sum over positives of log(exp(sim)/bottom) == sum_pos(sim) - total*log(bottom)
    sum_log = (sim * pos).sum(axis=1) - total * np.log(np.where(bottom > 0, bottom, 1.0))
    valid = total > 0
    per = np.where(valid, -sum_log / np.maximum(total, 1), 0.0)
    scl = float(per.sum() / valid.sum()) if valid.sum() > 0 else 0.0
    return logits, (1.0 - lam2) * ce + lam2 * scl, scl


if __name__ == "__main__":
    key = jax.random.PRNGKey(0)

    # ----- small case (single block): batch=8, feat_dim=32, num_classes=4 -----
    N, D, C = 8, 32, 4
    k_feat, k_w, k_b, k_lab, key = jax.random.split(key, 5)
    feat = jax.random.normal(k_feat, (N, D), jnp.float32)
    bound = 1.0 / np.sqrt(D)
    weight = jax.random.uniform(k_w, (C, D), jnp.float32, -bound, bound)
    bias = jax.random.uniform(k_b, (C,), jnp.float32, -bound, bound)
    labels = jax.random.randint(k_lab, (N,), 0, C, jnp.int32)

    logits, loss, scl = lsoftmax_forward(feat, labels, weight, bias, t_scale=0.3, lam2=0.1)
    jax.block_until_ready((logits, loss, scl))
    ref_logits, ref_loss, ref_scl = _ref_forward(np.asarray(feat), np.asarray(labels),
                                                 np.asarray(weight), np.asarray(bias))
    np.testing.assert_allclose(np.asarray(logits), ref_logits, rtol=1e-4, atol=1e-4)
    np.testing.assert_allclose(float(loss), ref_loss, rtol=1e-4, atol=1e-4)
    np.testing.assert_allclose(float(scl), ref_scl, rtol=1e-4, atol=1e-4)

    # ----- larger case exercising the (i, j) grid and streaming accumulators -----
    N2, D2, C2 = 160, 32, 6
    k_feat, k_w, k_b, k_lab, key = jax.random.split(key, 5)
    feat2 = jax.random.normal(k_feat, (N2, D2), jnp.float32)
    bound2 = 1.0 / np.sqrt(D2)
    weight2 = jax.random.uniform(k_w, (C2, D2), jnp.float32, -bound2, bound2)
    bias2 = jax.random.uniform(k_b, (C2,), jnp.float32, -bound2, bound2)
    labels2 = jax.random.randint(k_lab, (N2,), 0, C2, jnp.int32)

    logits2, loss2, scl2 = lsoftmax_forward(feat2, labels2, weight2, bias2, t_scale=0.3, lam2=0.1)
    jax.block_until_ready((logits2, loss2, scl2))
    ref_logits2, ref_loss2, ref_scl2 = _ref_forward(np.asarray(feat2), np.asarray(labels2),
                                                    np.asarray(weight2), np.asarray(bias2))
    np.testing.assert_allclose(np.asarray(logits2), ref_logits2, rtol=5e-4, atol=5e-4)
    np.testing.assert_allclose(float(loss2), ref_loss2, rtol=5e-4, atol=5e-4)
    np.testing.assert_allclose(float(scl2), ref_scl2, rtol=5e-4, atol=5e-4)

    print("KERNEL_OK")
</pallas_src>

<mosaic_0001>
module attributes {stable_mosaic.version = 11 : i64} {
  func.func @_lsoftmax_kernel(%arg0: i32, %arg1: i32, %arg2: memref<8x32xf32, #tpu.memory_space<vmem>>, %arg3: memref<8x32xf32, #tpu.memory_space<vmem>>, %arg4: memref<32x128xf32, #tpu.memory_space<vmem>>, %arg5: memref<1x128xf32, #tpu.memory_space<vmem>>, %arg6: memref<8x1xi32, #tpu.memory_space<vmem>>, %arg7: memref<1x8xi32, #tpu.memory_space<vmem>>, %arg8: memref<8x128xf32, #tpu.memory_space<vmem>>, %arg9: memref<8x1xf32, #tpu.memory_space<vmem>>, %arg10: memref<8x1xf32, #tpu.memory_space<vmem>>, %arg11: memref<8x1xf32, #tpu.memory_space<vmem>>, %arg12: memref<8x32xf32, #tpu.memory_space<vmem>>, %arg13: memref<8x1xf32, #tpu.memory_space<vmem>>, %arg14: memref<8x1xf32, #tpu.memory_space<vmem>>, %arg15: memref<8x1xf32, #tpu.memory_space<vmem>>) attributes {dimension_semantics = [#tpu.dimension_semantics<parallel>, #tpu.dimension_semantics<arbitrary>], iteration_bounds = array<i64: 1, 1>, scalar_prefetch = 0 : i64, scratch_operands = 4 : i64, tpu.core_type = #tpu.core_type<tc>, window_params = [{transform_indices = @transform_0, window_bounds = array<i64: 8, 32>}, {transform_indices = @transform_1, window_bounds = array<i64: 8, 32>}, {pipeline_mode = #tpu.pipeline_mode<synchronous>, transform_indices = @transform_2, window_bounds = array<i64: 32, 128>}, {pipeline_mode = #tpu.pipeline_mode<synchronous>, transform_indices = @transform_3, window_bounds = array<i64: 1, 128>}, {transform_indices = @transform_4, window_bounds = array<i64: 8, 1>}, {transform_indices = @transform_5, window_bounds = array<i64: 1, 8>}, {transform_indices = @transform_6, window_bounds = array<i64: 8, 128>}, {transform_indices = @transform_7, window_bounds = array<i64: 8, 1>}, {transform_indices = @transform_8, window_bounds = array<i64: 8, 1>}, {transform_indices = @transform_9, window_bounds = array<i64: 8, 1>}]} {
    %c0_i32 = arith.constant 0 : i32
    %0 = arith.cmpi eq, %arg1, %c0_i32 : i32
    %1 = arith.extui %0 : i1 to i32
    %c0_i32_0 = arith.constant 0 : i32
    %2 = arith.cmpi ne, %1, %c0_i32_0 : i32
    scf.if %2 {
      %c0_32 = arith.constant 0 : index
      %c0_33 = arith.constant 0 : index
      %59 = vector.load %arg2[%c0_32, %c0_33] : memref<8x32xf32, #tpu.memory_space<vmem>>, vector<8x32xf32>
      %c0_34 = arith.constant 0 : index
      %c0_35 = arith.constant 0 : index
      %60 = vector.load %arg4[%c0_34, %c0_35] : memref<32x128xf32, #tpu.memory_space<vmem>>, vector<32x128xf32>
      %cst_36 = arith.constant dense<0.000000e+00> : vector<8x128xf32>
      %61 = tpu.matmul %59, %60, %cst_36 {dimension_numbers = #tpu.dot_dimension_numbers<[1], [0], [0], [1], [0, 0, 1, 1], [], []>} : vector<8x32xf32>, vector<32x128xf32>, vector<8x128xf32> -> vector<8x128xf32>
      %c0_37 = arith.constant 0 : index
      %c0_38 = arith.constant 0 : index
      %62 = vector.load %arg5[%c0_37, %c0_38] : memref<1x128xf32, #tpu.memory_space<vmem>>, vector<1x128xf32>
      %63 = vector.broadcast %62 : vector<1x128xf32> to vector<8x128xf32>
      %64 = arith.addf %61, %63 : vector<8x128xf32>
      %c0_39 = arith.constant 0 : index
      %c0_40 = arith.constant 0 : index
      %65 = vector.load %arg8[%c0_39, %c0_40] : memref<8x128xf32, #tpu.memory_space<vmem>>, vector<8x128xf32>
      tpu.vector_store %arg8[%c0_39, %c0_40], %64 {strides = array<i32>} : memref<8x128xf32, #tpu.memory_space<vmem>>, vector<8x128xf32>,
      %66 = tpu.iota {dimensions = array<i32: 1>} : vector<8x128xi32>
      %c4_i32 = arith.constant 4 : i32
      %67 = vector.broadcast %c4_i32 : i32 to vector<8x128xi32>
      %68 = arith.cmpi slt, %66, %67 : vector<8x128xi32>
      %cst_41 = arith.constant 0xFF800000 : f32
      %69 = vector.broadcast %cst_41 : f32 to vector<8x128xf32>
      %70 = arith.select %68, %64, %69 : vector<8x128xi1>, vector<8x128xf32>
      %cst_42 = arith.constant dense<0xFF800000> : vector<8xf32>
      %71 = vector.multi_reduction <maximumf>, %70, %cst_42 [1] : vector<8x128xf32> to vector<8xf32>
      %72 = vector.shape_cast %71 : vector<8xf32> to vector<8x1xf32>
      %73 = vector.broadcast %72 : vector<8x1xf32> to vector<8x128xf32>
      %74 = arith.subf %64, %73 : vector<8x128xf32>
      %75 = math.exp %74 : vector<8x128xf32>
      %cst_43 = arith.constant 0.000000e+00 : f32
      %76 = vector.broadcast %cst_43 : f32 to vector<8x128xf32>
      %77 = arith.select %68, %75, %76 : vector<8x128xi1>, vector<8x128xf32>
      %cst_44 = arith.constant dense<0.000000e+00> : vector<8xf32>
      %78 = vector.multi_reduction <add>, %77, %cst_44 [1] : vector<8x128xf32> to vector<8xf32>
      %79 = vector.shape_cast %78 : vector<8xf32> to vector<8x1xf32>
      %80 = math.log %79 : vector<8x1xf32>
      %81 = arith.addf %72, %80 : vector<8x1xf32>
      %c0_45 = arith.constant 0 : index
      %c0_46 = arith.constant 0 : index
      %82 = vector.load %arg6[%c0_45, %c0_46] : memref<8x1xi32, #tpu.memory_space<vmem>>, vector<8x1xi32>
      %83 = vector.broadcast %82 : vector<8x1xi32> to vector<8x128xi32>
      %84 = arith.cmpi eq, %66, %83 : vector<8x128xi32>
      %85 = arith.extui %84 : vector<8x128xi1> to vector<8x128xi32>
      %86 = arith.sitofp %85 : vector<8x128xi32> to vector<8x128xf32>
      %87 = arith.mulf %64, %86 : vector<8x128xf32>
      %cst_47 = arith.constant dense<0.000000e+00> : vector<8xf32>
      %88 = vector.multi_reduction <add>, %87, %cst_47 [1] : vector<8x128xf32> to vector<8xf32>
      %89 = vector.shape_cast %88 : vector<8xf32> to vector<8x1xf32>
      %90 = arith.subf %81, %89 : vector<8x1xf32>
      %c0_48 = arith.constant 0 : index
      %c0_49 = arith.constant 0 : index
      %91 = vector.load %arg9[%c0_48, %c0_49] : memref<8x1xf32, #tpu.memory_space<vmem>>, vector<8x1xf32>
      tpu.vector_store %arg9[%c0_48, %c0_49], %90 {strides = array<i32>} : memref<8x1xf32, #tpu.memory_space<vmem>>, vector<8x1xf32>,
      %92 = arith.mulf %59, %59 : vector<8x32xf32>
      %cst_50 = arith.constant dense<0.000000e+00> : vector<8xf32>
      %93 = vector.multi_reduction <add>, %92, %cst_50 [1] : vector<8x32xf32> to vector<8xf32>
      %94 = vector.shape_cast %93 : vector<8xf32> to vector<8x1xf32>
      %cst_51 = arith.constant 1.000000e-24 : f32
      %95 = vector.broadcast %cst_51 : f32 to vector<8x1xf32>
      %96 = arith.maximumf %94, %95 : vector<8x1xf32>
      %97 = math.rsqrt %96 : vector<8x1xf32>
      %98 = vector.broadcast %97 : vector<8x1xf32> to vector<8x32xf32>
      %99 = arith.mulf %59, %98 : vector<8x32xf32>
      %c0_52 = arith.constant 0 : index
      %c0_53 = arith.constant 0 : index
      %100 = vector.load %arg12[%c0_52, %c0_53] : memref<8x32xf32, #tpu.memory_space<vmem>>, vector<8x32xf32>
      tpu.vector_store %arg12[%c0_52, %c0_53], %99 {strides = array<i32>} : memref<8x32xf32, #tpu.memory_space<vmem>>, vector<8x32xf32>,
      %cst_54 = arith.constant 0.000000e+00 : f32
      %101 = vector.broadcast %cst_54 : f32 to vector<8x1xf32>
      %c0_55 = arith.constant 0 : index
      %c0_56 = arith.constant 0 : index
      %102 = vector.load %arg13[%c0_55, %c0_56] : memref<8x1xf32, #tpu.memory_space<vmem>>, vector<8x1xf32>
      tpu.vector_store %arg13[%c0_55, %c0_56], %101 {strides = array<i32>} : memref<8x1xf32, #tpu.memory_space<vmem>>, vector<8x1xf32>,
      %cst_57 = arith.constant 0.000000e+00 : f32
      %103 = vector.broadcast %cst_57 : f32 to vector<8x1xf32>
      %c0_58 = arith.constant 0 : index
      %c0_59 = arith.constant 0 : index
      %104 = vector.load %arg14[%c0_58, %c0_59] : memref<8x1xf32, #tpu.memory_space<vmem>>, vector<8x1xf32>
      tpu.vector_store %arg14[%c0_58, %c0_59], %103 {strides = array<i32>} : memref<8x1xf32, #tpu.memory_space<vmem>>, vector<8x1xf32>,
      %cst_60 = arith.constant 0.000000e+00 : f32
      %105 = vector.broadcast %cst_60 : f32 to vector<8x1xf32>
      %c0_61 = arith.constant 0 : index
      %c0_62 = arith.constant 0 : index
      %106 = vector.load %arg15[%c0_61, %c0_62] : memref<8x1xf32, #tpu.memory_space<vmem>>, vector<8x1xf32>
      tpu.vector_store %arg15[%c0_61, %c0_62], %105 {strides = array<i32>} : memref<8x1xf32, #tpu.memory_space<vmem>>, vector<8x1xf32>,
    } else {
    }
    %c0 = arith.constant 0 : index
    %c0_1 = arith.constant 0 : index
    %3 = vector.load %arg3[%c0, %c0_1] : memref<8x32xf32, #tpu.memory_space<vmem>>, vector<8x32xf32>
    %4 = arith.mulf %3, %3 : vector<8x32xf32>
    %cst = arith.constant dense<0.000000e+00> : vector<8xf32>
    %5 = vector.multi_reduction <add>, %4, %cst [1] : vector<8x32xf32> to vector<8xf32>
    %6 = vector.shape_cast %5 : vector<8xf32> to vector<8x1xf32>
    %cst_2 = arith.constant 1.000000e-24 : f32
    %7 = vector.broadcast %cst_2 : f32 to vector<8x1xf32>
    %8 = arith.maximumf %6, %7 : vector<8x1xf32>
    %9 = math.rsqrt %8 : vector<8x1xf32>
    %10 = vector.broadcast %9 : vector<8x1xf32> to vector<8x32xf32>
    %11 = arith.mulf %3, %10 : vector<8x32xf32>
    %c0_3 = arith.constant 0 : index
    %c0_4 = arith.constant 0 : index
    %12 = vector.load %arg12[%c0_3, %c0_4] : memref<8x32xf32, #tpu.memory_space<vmem>>, vector<8x32xf32>
    %cst_5 = arith.constant dense<0.000000e+00> : vector<8x8xf32>
    %13 = tpu.matmul %12, %11, %cst_5 {dimension_numbers = #tpu.dot_dimension_numbers<[1], [1], [0], [0], [0, 0, 1, 0], [], []>} : vector<8x32xf32>, vector<8x32xf32>, vector<8x8xf32> -> vector<8x8xf32>
    %cst_6 = arith.constant 3.33333325 : f32
    %14 = vector.broadcast %cst_6 : f32 to vector<8x8xf32>
    %15 = arith.mulf %13, %14 : vector<8x8xf32>
    %c8_i32 = arith.constant 8 : i32
    %16 = arith.muli %arg0, %c8_i32 : i32
    %17 = tpu.iota {dimensions = array<i32: 0>} : vector<8x8xi32>
    %18 = vector.broadcast %16 : i32 to vector<8x8xi32>
    %19 = arith.addi %18, %17 : vector<8x8xi32>
    %c8_i32_7 = arith.constant 8 : i32
    %20 = arith.muli %arg1, %c8_i32_7 : i32
    %21 = tpu.iota {dimensions = array<i32: 1>} : vector<8x8xi32>
    %22 = vector.broadcast %20 : i32 to vector<8x8xi32>
    %23 = arith.addi %22, %21 : vector<8x8xi32>
    %c8_i32_8 = arith.constant 8 : i32
    %24 = vector.broadcast %c8_i32_8 : i32 to vector<8x8xi32>
    %25 = arith.cmpi slt, %23, %24 : vector<8x8xi32>
    %26 = arith.cmpi ne, %19, %23 : vector<8x8xi32>
    %27 = arith.andi %26, %25 : vector<8x8xi1>
    %c0_9 = arith.constant 0 : index
    %c0_10 = arith.constant 0 : index
    %28 = vector.load %arg6[%c0_9, %c0_10] : memref<8x1xi32, #tpu.memory_space<vmem>>, vector<8x1xi32>
    %c0_11 = arith.constant 0 : index
    %c0_12 = arith.constant 0 : index
    %29 = vector.load %arg7[%c0_11, %c0_12] : memref<1x8xi32, #tpu.memory_space<vmem>>, vector<1x8xi32>
    %30 = vector.broadcast %28 : vector<8x1xi32> to vector<8x8xi32>
    %31 = vector.broadcast %29 : vector<1x8xi32> to vector<8x8xi32>
    %32 = arith.cmpi eq, %30, %31 : vector<8x8xi32>
    %33 = arith.andi %27, %32 : vector<8x8xi1>
    %34 = math.exp %15 : vector<8x8xf32>
    %c0_13 = arith.constant 0 : index
    %c0_14 = arith.constant 0 : index
    %35 = vector.load %arg13[%c0_13, %c0_14] : memref<8x1xf32, #tpu.memory_space<vmem>>, vector<8x1xf32>
    %cst_15 = arith.constant 0.000000e+00 : f32
    %36 = vector.broadcast %cst_15 : f32 to vector<8x8xf32>
    %37 = arith.select %27, %34, %36 : vector<8x8xi1>, vector<8x8xf32>
    %cst_16 = arith.constant dense<0.000000e+00> : vector<8xf32>
    %38 = vector.multi_reduction <add>, %37, %cst_16 [1] : vector<8x8xf32> to vector<8xf32>
    %39 = vector.shape_cast %38 : vector<8xf32> to vector<8x1xf32>
    %40 = arith.addf %35, %39 : vector<8x1xf32>
    %c0_17 = arith.constant 0 : index
    %c0_18 = arith.constant 0 : index
    %41 = vector.load %arg13[%c0_17, %c0_18] : memref<8x1xf32, #tpu.memory_space<vmem>>, vector<8x1xf32>
    tpu.vector_store %arg13[%c0_17, %c0_18], %40 {strides = array<i32>} : memref<8x1xf32, #tpu.memory_space<vmem>>, vector<8x1xf32>,
    %c0_19 = arith.constant 0 : index
    %c0_20 = arith.constant 0 : index
    %42 = vector.load %arg14[%c0_19, %c0_20] : memref<8x1xf32, #tpu.memory_space<vmem>>, vector<8x1xf32>
    %cst_21 = arith.constant 0.000000e+00 : f32
    %43 = vector.broadcast %cst_21 : f32 to vector<8x8xf32>
    %44 = arith.select %33, %15, %43 : vector<8x8xi1>, vector<8x8xf32>
    %cst_22 = arith.constant dense<0.000000e+00> : vector<8xf32>
    %45 = vector.multi_reduction <add>, %44, %cst_22 [1] : vector<8x8xf32> to vector<8xf32>
    %46 = vector.shape_cast %45 : vector<8xf32> to vector<8x1xf32>
    %47 = arith.addf %42, %46 : vector<8x1xf32>
    %c0_23 = arith.constant 0 : index
    %c0_24 = arith.constant 0 : index
    %48 = vector.load %arg14[%c0_23, %c0_24] : memref<8x1xf32, #tpu.memory_space<vmem>>, vector<8x1xf32>
    tpu.vector_store %arg14[%c0_23, %c0_24], %47 {strides = array<i32>} : memref<8x1xf32, #tpu.memory_space<vmem>>, vector<8x1xf32>,
    %c0_25 = arith.constant 0 : index
    %c0_26 = arith.constant 0 : index
    %49 = vector.load %arg15[%c0_25, %c0_26] : memref<8x1xf32, #tpu.memory_space<vmem>>, vector<8x1xf32>
    %50 = arith.extui %33 : vector<8x8xi1> to vector<8x8xi32>
    %51 = arith.sitofp %50 : vector<8x8xi32> to vector<8x8xf32>
    %cst_27 = arith.constant dense<0.000000e+00> : vector<8xf32>
    %52 = vector.multi_reduction <add>, %51, %cst_27 [1] : vector<8x8xf32> to vector<8xf32>
    %53 = vector.shape_cast %52 : vector<8xf32> to vector<8x1xf32>
    %54 = arith.addf %49, %53 : vector<8x1xf32>
    %c0_28 = arith.constant 0 : index
    %c0_29 = arith.constant 0 : index
    %55 = vector.load %arg15[%c0_28, %c0_29] : memref<8x1xf32, #tpu.memory_space<vmem>>, vector<8x1xf32>
    tpu.vector_store %arg15[%c0_28, %c0_29], %54 {strides = array<i32>} : memref<8x1xf32, #tpu.memory_space<vmem>>, vector<8x1xf32>,
    %c0_i32_30 = arith.constant 0 : i32
    %56 = arith.cmpi eq, %arg1, %c0_i32_30 : i32
    %57 = arith.extui %56 : i1 to i32
    %c0_i32_31 = arith.constant 0 : i32
    %58 = arith.cmpi ne, %57, %c0_i32_31 : i32
    scf.if %58 {
      %c0_32 = arith.constant 0 : index
      %c0_33 = arith.constant 0 : index
      %59 = vector.load %arg15[%c0_32, %c0_33] : memref<8x1xf32, #tpu.memory_space<vmem>>, vector<8x1xf32>
      %c0_34 = arith.constant 0 : index
      %c0_35 = arith.constant 0 : index
      %60 = vector.load %arg13[%c0_34, %c0_35] : memref<8x1xf32, #tpu.memory_space<vmem>>, vector<8x1xf32>
      %cst_36 = arith.constant 1.000000e-30 : f32
      %61 = vector.broadcast %cst_36 : f32 to vector<8x1xf32>
      %62 = arith.maximumf %60, %61 : vector<8x1xf32>
      %c0_37 = arith.constant 0 : index
      %c0_38 = arith.constant 0 : index
      %63 = vector.load %arg14[%c0_37, %c0_38] : memref<8x1xf32, #tpu.memory_space<vmem>>, vector<8x1xf32>
      %64 = math.log %62 : vector<8x1xf32>
      %65 = arith.mulf %59, %64 : vector<8x1xf32>
      %66 = arith.subf %63, %65 : vector<8x1xf32>
      %cst_39 = arith.constant 0.000000e+00 : f32
      %67 = vector.broadcast %cst_39 : f32 to vector<8x1xf32>
      %68 = arith.cmpf ogt, %59, %67 : vector<8x1xf32>
      %cst_40 = arith.constant 0.000000e+00 : f32
      %69 = vector.broadcast %cst_40 : f32 to vector<8x1xf32>
      %70 = arith.subf %69, %66 : vector<8x1xf32>
      %cst_41 = arith.constant 1.000000e+00 : f32
      %71 = vector.broadcast %cst_41 : f32 to vector<8x1xf32>
      %72 = arith.maximumf %59, %71 : vector<8x1xf32>
      %73 = arith.divf %70, %72 : vector<8x1xf32>
      %cst_42 = arith.constant 0.000000e+00 : f32
      %74 = vector.broadcast %cst_42 : f32 to vector<8x1xf32>
      %75 = arith.select %68, %73, %74 : vector<8x1xi1>, vector<8x1xf32>
      %c0_43 = arith.constant 0 : index
      %c0_44 = arith.constant 0 : index
      %76 = vector.load %arg10[%c0_43, %c0_44] : memref<8x1xf32, #tpu.memory_space<vmem>>, vector<8x1xf32>
      tpu.vector_store %arg10[%c0_43, %c0_44], %75 {strides = array<i32>} : memref<8x1xf32, #tpu.memory_space<vmem>>, vector<8x1xf32>,
      %77 = arith.extui %68 : vector<8x1xi1> to vector<8x1xi32>
      %78 = arith.sitofp %77 : vector<8x1xi32> to vector<8x1xf32>
      %c0_45 = arith.constant 0 : index
      %c0_46 = arith.constant 0 : index
      %79 = vector.load %arg11[%c0_45, %c0_46] : memref<8x1xf32, #tpu.memory_space<vmem>>, vector<8x1xf32>
      tpu.vector_store %arg11[%c0_45, %c0_46], %78 {strides = array<i32>} : memref<8x1xf32, #tpu.memory_space<vmem>>, vector<8x1xf32>,
    } else {
    }
    return
  }
  func.func @transform_0(%arg0: i32, %arg1: i32) -> (i32, i32) {
    %c0_i32 = arith.constant 0 : i32
    %c0_i32_0 = arith.constant 0 : i32
    return %arg0, %c0_i32 : i32, i32
  }
  func.func @transform_1(%arg0: i32, %arg1: i32) -> (i32, i32) {
    %c0_i32 = arith.constant 0 : i32
    %c0_i32_0 = arith.constant 0 : i32
    return %arg1, %c0_i32 : i32, i32
  }
  func.func @transform_2(%arg0: i32, %arg1: i32) -> (i32, i32) {
    %c0_i32 = arith.constant 0 : i32
    %c0_i32_0 = arith.constant 0 : i32
    %c0_i32_1 = arith.constant 0 : i32
    return %c0_i32, %c0_i32_0 : i32, i32
  }
  func.func @transform_3(%arg0: i32, %arg1: i32) -> (i32, i32) {
    %c0_i32 = arith.constant 0 : i32
    %c0_i32_0 = arith.constant 0 : i32
    %c0_i32_1 = arith.constant 0 : i32
    return %c0_i32, %c0_i32_0 : i32, i32
  }
  func.func @transform_4(%arg0: i32, %arg1: i32) -> (i32, i32) {
    %c0_i32 = arith.constant 0 : i32
    %c0_i32_0 = arith.constant 0 : i32
    return %arg0, %c0_i32 : i32, i32
  }
  func.func @transform_5(%arg0: i32, %arg1: i32) -> (i32, i32) {
    %c0_i32 = arith.constant 0 : i32
    %c0_i32_0 = arith.constant 0 : i32
    return %c0_i32, %arg1 : i32, i32
  }
  func.func @transform_6(%arg0: i32, %arg1: i32) -> (i32, i32) {
    %c0_i32 = arith.constant 0 : i32
    %c0_i32_0 = arith.constant 0 : i32
    return %arg0, %c0_i32 : i32, i32
  }
  func.func @transform_7(%arg0: i32, %arg1: i32) -> (i32, i32) {
    %c0_i32 = arith.constant 0 : i32
    %c0_i32_0 = arith.constant 0 : i32
    return %arg0, %c0_i32 : i32, i32
  }
  func.func @transform_8(%arg0: i32, %arg1: i32) -> (i32, i32) {
    %c0_i32 = arith.constant 0 : i32
    %c0_i32_0 = arith.constant 0 : i32
    return %arg0, %c0_i32 : i32, i32
  }
  func.func @transform_9(%arg0: i32, %arg1: i32) -> (i32, i32) {
    %c0_i32 = arith.constant 0 : i32
    %c0_i32_0 = arith.constant 0 : i32
    return %arg0, %c0_i32 : i32, i32
  }
}

</mosaic_0001>

<bundles_post_ra>
// kernel: tpu_custom_call.1
= control target key start
LH: loop header
LB: loop body
LE: loop exit
PB: predicated region body
PF: predicated region fallthrough
CT: control target
= control target key end

     0   :  { %15 = vsyncpa [#allocation7], 0  ;;  %s678_s0 = inlined_call_operand.vmem [shape: f32[8,32], index: 0, kind: input, shape index: {}]   ;;  %s679_s1 = inlined_call_operand.hbm [shape: f32[8,32], index: 1, kind: input, shape index: {}]   ;;  %s680_s2 = inlined_call_operand.hbm [shape: f32[32,128], index: 2, kind: input, shape index: {}]   ;;  %s681_s3 = inlined_call_operand.vmem [shape: f32[1,128], index: 3, kind: input, shape index: {}]   ;;  %s682_s4 = inlined_call_operand.vmem [shape: s32[8,1], index: 4, kind: input, shape index: {}]   ;;  %s683_s5 = inlined_call_operand.vmem [shape: s32[1,8], index: 5, kind: input, shape index: {}]   ;;  %s684_s6 = inlined_call_operand.hbm [shape: f32[8,128], index: 6, kind: output, shape index: {0}]   ;;  %s685_s7 = inlined_call_operand.vmem [shape: f32[8,1], index: 7, kind: output, shape index: {1}]   ;;  %s686_s8 = inlined_call_operand.vmem [shape: f32[8,1], index: 8, kind: output, shape index: {2}]   ;;  %s687_s9 = inlined_call_operand.vmem [shape: f32[8,1], index: 9, kind: output, shape index: {3}]  }
   0x1   :  { %16 = vsyncpa [#allocation10], 0 }
   0x2   :  { %17 = vsyncpa [#allocation8], 0  ;;  %s504_s30 = smov [#allocation6]   ;;  %s505_s11 = smov [#allocation9]  }
   0x3   :  { %s26_s10 = sshll.u32 %s504_s30, 4  ;;  %s35_s12 = sshll.u32 %s505_s11, 4  ;;  %s27_s10 = int_to_ptr.vmem [resolvable:$true] %s26_s10  ;;  %s563_s12 = int_to_ptr.vmem [resolvable:$true] %s35_s12 }
   0x4   :  { %s432_s15 = scalar_lea.hbm %s679_s1, 128 }
   0x5   :  { %p433_p0 = scmp.ne.s32.totalorder %s679_s1, %s432_s15  ;;  %p436_p1 = scmp.lt.u32.totalorder %s432_s15, %s679_s1 }
   0x7   :  { %p438_p2 = pnand %p436_p1, %p433_p0 }
   0x9   :  { %441 = shalt.err (!%p438_p2)
}
   0xa   :  { %s442_s20 = scalar_lea.vmem %s27_s10, 128  ;;  %p447_p4 = scmp.lt.s32.totalorder %s27_s10, %s27_s10 }
   0xb   :  { %p443_p3 = scmp.ne.s32.totalorder %s27_s10, %s442_s20  ;;  %p448_p5 = scmp.lt.s32.totalorder %s442_s20, %s442_s20 }
   0xd   :  { %p449_p6 = por %p448_p5, %p447_p4 }
   0xf   :  { %p450_p7 = pnand %p449_p6, %p443_p3 }
  0x11   :  { %453 = shalt.err (!%p450_p7)
}
  0x12   :  { %29 = dma.hbm_to_vmem [thread:$0]  %s679_s1, 128, %s27_s10, [#allocation7]  }
  0x13   :  { %s454_s25 = scalar_lea.hbm %s680_s2, 512 }
  0x14   :  { %p455_p8 = scmp.ne.s32.totalorder %s680_s2, %s454_s25  ;;  %p458_p9 = scmp.lt.u32.totalorder %s454_s25, %s680_s2 }
  0x16   :  { %p460_p10 = pnand %p458_p9, %p455_p8 }
  0x18   :  { %463 = shalt.err (!%p460_p10)
}
  0x19   :  { %s464_s30 = scalar_lea.vmem %s563_s12, 512  ;;  %p469_p12 = scmp.lt.s32.totalorder %s563_s12, %s563_s12 }
  0x1a   :  { %p465_p11 = scmp.ne.s32.totalorder %s563_s12, %s464_s30  ;;  %p470_p13 = scmp.lt.s32.totalorder %s464_s30, %s464_s30 }
  0x1c   :  { %p471_p0 = por %p470_p13, %p469_p12 }
  0x1e   :  { %p472_p1 = pnand %p471_p0, %p465_p11 }
  0x20   :  { %475 = shalt.err (!%p472_p1)
}
  0x21   :  { %s506_s1 = smov 128   ;;  %s507_s10 = smov 8  }
  0x22   :  { %41 = dma.hbm_to_vmem [thread:$0]  %s680_s2, 512, %s563_s12, [#allocation10], %s506_s1, %s506_s1, %s507_s10  }
  0x23   :  { %498 = dma.done.wait [#allocation7], 128  }
  0x24   :  { %499 = vsyncadd [#allocation7], 4294967168 }
  0x25   :  { %500 = dma.done.wait [#allocation10], 512  }
  0x26   :  { %501 = vsyncadd [#allocation10], 4294966784  ;;  %v508_v0 = vmov 0.0|0.0   ;;  %vm509_vm0 = vmmov 0   ;;  %v510_v1 = vmov 0.0   ;;  %v511_v2 = vmov 0  }
  0x27   :  { %401 = vmatprep.subr.bf16.mxu0 %v508_v0  ;;  %393 = vmatprep.mubr.msk.f32.mxu0 %vm509_vm0, %v510_v1  ;;  %v59_v3 = vld [vmem:[#allocation9] sm:$0xff]  ;;  %v60_v4 = vld [vmem:[#allocation9 + $0x8] sm:$0xff]  ;;  %v58_v5 = vld [vmem:[%s678_s0] sm:$0xff]  ;;  %vm70_vm1 = vcmask 261120   ;;  %v145_v25 = vlaneseq  ;;  %vm171_vm3 = vcmask 7168   ;;  %vm299_vm9 = vcmask 64512  }
  0x28   :  { %417 = vset.pattern.permute.xlu0 %v511_v2  ;;  %396 = vmatprep.subr.mxu1 %v510_v1  ;;  %v402_v6 = vpack.c.bf16 %v60_v4, %v59_v3  ;;  %v173_v7 = vmul.f32 %v58_v5, %v58_v5  ;;  %v61_v8 = vld [vmem:[#allocation9 + $0x10] sm:$0xff]  ;;  %v62_v9 = vld [vmem:[#allocation9 + $0x18] sm:$0xff]  ;;  %181 = vst.msk [vmem:[#allocation3] sm:$0xff] %vm171_vm3, %v510_v1  ;;  %182 = vst.msk [vmem:[#allocation4] sm:$0xff] %vm171_vm3, %v510_v1 }
  0x29   :  { %398 = vmatprep.mubr.msk.f32.mxu1 %vm509_vm0, %v510_v1  ;;  %416 = vset.pattern.permute.xlu1 %v511_v2  ;;  %v184_v10 = vld [vmem:[#allocation6] sm:$0xff]  ;;  %v405_v13 = vpack.c.bf16 %v62_v9, %v61_v8  ;;  %v146_v26 = vand.u32 127, %v145_v25  ;;  %183 = vst.msk [vmem:[#allocation5] sm:$0xff] %vm171_vm3, %v510_v1  ;;  %v273_v32 = vshrl.u32 %v145_v25, 7 }
  0x2a   :  { %v185_v11 = vmul.f32 %v184_v10, %v184_v10  ;;  %403 = vmatpush3.bf16.msra.mxu0 %v402_v6  ;;  %v174_v12 = vsel %vm70_vm1, %v173_v7, 0.0  ;;  %v160_v15 = vld [vmem:[%s682_s4] sm:$0xff] }
  0x2b   :  { %175 = vadd.xlane.f32.xlu0 %v174_v12  ;;  %404 = vmatprep.subr.bf16.mxu0 %v508_v0  ;;  %v370_v27 = vld [vmem:[%s681_s3] ss:$0 sm:$0xff]  ;;  %vm147_vm2 = vcmp.lt.s32.totalorder %v146_v26, 4  ;;  %vm281_vm4 = vcmp.lt.s32.totalorder %v146_v26, 8  ;;  %vm282_vm5 = vcmp.ne.s32.totalorder %v273_v32, %v146_v26 }
  0x2c   :  { %v187_v14 = vsel %vm70_vm1, %v185_v11, 0.0  ;;  %v375_v34 = vld [vmem:[%s683_s5] ss:$0 sm:$0xff]  ;;  %vm624_vm6 = vmand %vm282_vm5, %vm281_vm4  ;;  %s512_s5 = smov [#allocation11]  }
  0x2d   :  { %s348_s17 = sshll.u32 %s512_s5, 4  ;;  %s349_s17 = int_to_ptr.vmem [resolvable:$true] %s348_s17 }
  0x2e   :  { %406 = vmatpush3.bf16.msra.mxu0 %v405_v13  ;;  %s476_s18 = scalar_lea.vmem %s349_s17, 128  ;;  %p481_p3 = scmp.lt.s32.totalorder %s349_s17, %s349_s17 }
  0x2f   :  { %188 = vadd.xlane.f32.xlu0 %v187_v14  ;;  %p477_p2 = scmp.ne.s32.totalorder %s349_s17, %s476_s18  ;;  %p482_p4 = scmp.lt.s32.totalorder %s476_s18, %s476_s18 }
  0x31   :  { %394 = vmatmul.mubr.msk.f32.vlgmr.msra.gmra.mrb[0].mxu0 %vm70_vm1, %v58_v5  ;;  %p483_p5 = por %p482_p4, %p481_p3 }
  0x33   :  { %p484_p6 = pnand %p483_p5, %p477_p2 }
  0x45   :  { %162 = vperm.xlu0 %417, %v160_v15  }
  0xb8   :  { %v176_v16 = vpop.xlane.xlu0 %175 }
  0xb9   :  { %v177_v17 = vmax.f32 %v176_v16, 1e-24 }
  0xbb   :  { %418 = vrsqrt.f32 %v177_v17 }
  0xbc   :  { %v189_v18 = vpop.xlane.xlu0 %188 }
  0xbd   :  { %v190_v19 = vmax.f32 %v189_v18, 1e-24 }
  0xbf   :  { %420 = vrsqrt.f32 %v190_v19 }
  0xc4   :  { %v163_v50 = vpop.permute.xlu0 %162 }
  0xc5   :  { %v419_v20 = vpop.eup %418  ;;  %vm164_vm10 = vcmp.eq.s32.totalorder %v146_v26, %v163_v50 }
  0xc6   :  { %v179_v21 = vmul.f32 %v419_v20, %v58_v5  ;;  %v372_v53 = vsel %vm164_vm10, 1.0, %v510_v1 }
  0xc8   :  { %180 = vst.msk [vmem:[#allocation2] sm:$0xff] %vm70_vm1, %v179_v21 }
  0xc9   :  { %v421_v22 = vpop.eup %420 }
  0xca   :  { %v192_v23 = vmul.f32 %v421_v22, %v184_v10 }
  0xcc   :  { %397 = vmatpush3.xpose.msk.msra.mxu1 %vm70_vm1, %v192_v23 }
  0xcf   :  { %v193_v24 = vld [vmem:[#allocation2] sm:$0xff] }
  0xd0   :  { %399 = vmatmul.mubr.msk.f32.vlgmr.msra.gmra.mrb[0].mxu1 %vm70_vm1, %v193_v24 }
 0x104   :  { %v140_v28 = vpop.f32.mrb[0].mxu0 }
 0x105   :  { %v141_v29 = vadd.f32 %v370_v27, %v140_v28  ;;  %v395_v30 = vpop.f32.mrb[1].mxu0 }
 0x107   :  { %144 = vst [vmem:[#allocation11] sm:$0xff] %v141_v29  ;;  %v148_v31 = vsel %vm147_vm2, %v141_v29, -inf  ;;  %v167_v55 = vmul.f32 %v372_v53, %v141_v29 }
 0x108   :  { %149 = vmax.xlane.f32.xlu1 %v148_v31 }
 0x119   :  { %287 = vperm.xlu1 %416, %v160_v15  }
 0x195   :  { %v619_v33 = vpop.xlane.xlu1 %149 }
 0x196   :  { %v151_v40 = vsub.f32 %v141_v29, %v619_v33 }
 0x198   :  { %v152_v45 = vmul.f32 1.442695, %v151_v40 }
 0x199   :  { %v288_v36 = vpop.permute.xlu1 %287 }
 0x19a   :  { %vm293_vm7 = vcmp.eq.s32.totalorder %v288_v36, %v375_v34 }
 0x19b   :  { %vm630_vm8 = vmand %vm624_vm6, %vm293_vm7 }
 0x19c   :  { %v376_v38 = vsel %vm630_vm8, 1.0, %v510_v1 }
 0x19d   :  { %v316_v39 = vsel %vm299_vm9, %v376_v38, 0.0 }
 0x19e   :  { %317 = vadd.xlane.f32.xlu0 %v316_v39 }
 0x1a3   :  { %v266_v41 = vpop.f32.mrb[0].mxu1 }
 0x1a4   :  { %v270_v42 = vmul.f32 3.3333333, %v266_v41  ;;  %v400_v43 = vpop.f32.mrb[1].mxu1 }
 0x1a6   :  { %v295_v44 = vmul.f32 1.442695, %v270_v42  ;;  %v307_v52 = vsel %vm630_vm8, %v270_v42, 0.0 }
 0x1a7   :  { %v308_v54 = vsel %vm299_vm9, %v307_v52, 0.0 }
 0x1a8   :  { %422 = vpow2.f32 %v295_v44 }
 0x1a9   :  { %424 = vpow2.f32 %v152_v45 }
 0x1b2   :  { %v423_v46 = vpop.eup %422 }
 0x1b3   :  { %v298_v47 = vsel %vm624_vm6, %v423_v46, 0.0  ;;  %v425_v49 = vpop.eup %424 }
 0x1b4   :  { %v300_v48 = vsel %vm299_vm9, %v298_v47, 0.0  ;;  %v154_v51 = vsel %vm147_vm2, %v425_v49, 0.0 }
 0x1b5   :  { %301 = vadd.xlane.f32.xlu1 %v300_v48 }
 0x1b9   :  { %155 = vadd.xlane.f32.xlu1 %v154_v51 }
 0x1bd   :  { %309 = vadd.xlane.f32.xlu1 %v308_v54 }
 0x1c1   :  { %168 = vadd.xlane.f32.xlu1 %v167_v55 }
 0x1c2   :  { %487 = shalt.err (!%p484_p6)
}
 0x1c3   :  { %s488_s21 = scalar_lea.hbm %s684_s6, 128 }
 0x1c4   :  { %p489_p7 = scmp.ne.s32.totalorder %s684_s6, %s488_s21  ;;  %p492_p8 = scmp.lt.u32.totalorder %s488_s21, %s684_s6 }
 0x1c6   :  { %p494_p9 = pnand %p492_p8, %p489_p7 }
 0x1c8   :  { %497 = shalt.err (!%p494_p9)
}
 0x1c9   :  { %351 = dma.vmem_to_hbm [thread:$0]  %s349_s17, 128, %s684_s6, [#allocation8]   ;;  %v313_v56 = vld [vmem:[#allocation5] sm:$0xff]  ;;  %v297_v61 = vld [vmem:[#allocation3] sm:$0xff]  ;;  %v306_v2 = vld [vmem:[#allocation4] sm:$0xff] }
 0x22b   :  { %v318_v57 = vpop.xlane.xlu0 %317 }
 0x22c   :  { %v319_v58 = vadd.f32 %v318_v57, %v313_v56 }
 0x22e   :  { %320 = vst.msk [vmem:[#allocation5] sm:$0xff] %vm171_vm3, %v319_v58 }
 0x235   :  { %v324_v59 = vld [vmem:[#allocation5] sm:$0xff] }
 0x236   :  { %vm332_vm11 = vcmp.gt.f32.partialorder %v324_v59, 0.0  ;;  %v334_v7 = vmax.f32 %v324_v59, 1.0 }
 0x237   :  { %v377_v60 = vsel %vm332_vm11, 1.0, %v510_v1 }
 0x238   :  { %341 = vst.msk [vmem:[%s687_s9] sm:$0xff] %vm171_vm3, %v377_v60 }
 0x242   :  { %v302_v62 = vpop.xlane.xlu1 %301 }
 0x243   :  { %v303_v63 = vadd.f32 %v302_v62, %v297_v61 }
 0x245   :  { %305 = vst.msk [vmem:[#allocation3] sm:$0xff] %vm171_vm3, %v303_v63 }
 0x246   :  { %v156_v0 = vpop.xlane.xlu1 %155 }
 0x247   :  { %426 = vlog2.f32 %v156_v0 }
 0x24a   :  { %v310_v3 = vpop.xlane.xlu1 %309 }
 0x24b   :  { %v311_v4 = vadd.f32 %v310_v3, %v306_v2 }
 0x24c   :  { %v325_v5 = vld [vmem:[#allocation3] sm:$0xff] }
 0x24d   :  { %v326_v6 = vmax.f32 %v325_v5, 1e-30  ;;  %312 = vst.msk [vmem:[#allocation4] sm:$0xff] %vm171_vm3, %v311_v4 }
 0x24e   :  { %v169_v10 = vpop.xlane.xlu1 %168 }
 0x24f   :  { %428 = vlog2.f32 %v326_v6 }
 0x250   :  { %430 = vrcp.f32 %v334_v7 }
 0x251   :  { %v427_v1 = vpop.eup %426 }
 0x252   :  { %v158_v8 = vmul.f32 0.6931472, %v427_v1 }
 0x254   :  { %v159_v9 = vadd.f32 %v158_v8, %v619_v33  ;;  %v327_v15 = vld [vmem:[#allocation4] sm:$0xff] }
 0x256   :  { %v170_v11 = vsub.f32 %v159_v9, %v169_v10 }
 0x258   :  { %172 = vst.msk [vmem:[%s685_s7] sm:$0xff] %vm171_vm3, %v170_v11 }
 0x259   :  { %v429_v12 = vpop.eup %428 }
 0x25a   :  { %v329_v13 = vmul.f32 0.6931472, %v429_v12  ;;  %v431_v17 = vpop.eup %430 }
 0x25c   :  { %v330_v14 = vmul.f32 %v329_v13, %v324_v59 }
 0x25e   :  { %v331_v16 = vsub.f32 %v327_v15, %v330_v14 }
 0x260   :  { %v333_v18 = vsub.f32 0.0, %v331_v16 }
 0x262   :  { %v336_v19 = vmul.f32 %v431_v17, %v333_v18 }
 0x264   :  { %v337_v20 = vsel %vm332_vm11, %v336_v19, 0.0 }
 0x265   :  { %338 = vst.msk [vmem:[%s686_s8] sm:$0xff] %vm171_vm3, %v337_v20 }
 0x266   :  { %502 = dma.done.wait [#allocation8], 128  }
 0x267   :  { %503 = vsyncadd [#allocation8], 4294967168 }
 0x268   :  { %367 = vsyncpa [#allocation7], 1 }
 0x269   :  { %368 = vsyncpa [#allocation10], 1 }
 0x26a   :  { %369 = vsyncpa [#allocation8], 1 }

</bundles_post_ra>
